<compile_context>
chip_gen: v5e
topology: v5e:2x2
jax: 0.10.0
libtpu: 0.0.40
codegen_flags: <defaults>
</compile_context>

<pallas_src>
import functools

import jax
import jax.numpy as jnp
from jax.experimental import pallas as pl
from jax.experimental.pallas import tpu as pltpu

HIDDEN = 32
LANE = 128  # lane width for the padded FC output / packed-parameter slab


def rnn_fused_kernel(x_ref, p_ref, out_ref, hn_ref, *, B, T, I, H):
    """Single-shot fused forward.

    x_ref:   (T*B, I)   inputs, rows ordered (t, b)
    p_ref:   (rows, 128) packed parameters (lane-padded):
               rows [0, I)            : W_ih^T        (cols 0..H-1)
               rows [I, I+H)          : W_hh^T        (cols 0..H-1)
               row   I+H              : b_ih + b_hh   (cols 0..H-1)
               rows [I+H+1, I+2H+1)   : W_fc^T        (cols 0..127, zero-padded)
               row   I+2H+1           : b_fc          (cols 0..127, zero-padded)
    out_ref: (T*B, 128) fc(hidden states), rows ordered (t, b), lanes >= O are 0
    hn_ref:  (1, B, H)  final hidden state
    """
    # Static slices of the packed parameter slab (done once, off critical path).
    wih = p_ref[0:I, 0:H]                        # (I, H)
    whh = p_ref[I:I + H, 0:H]                    # (H, H), kept in vregs
    b = p_ref[I + H:I + H + 1, 0:H]              # (1, H)
    wfc = p_ref[I + H + 1:I + 2 * H + 1, :]      # (H, 128) lane-dense
    bfc = p_ref[I + 2 * H + 1:I + 2 * H + 2, :]  # (1, 128)

    # (1) Hoisted input projection: ONE MXU matmul for all timesteps + fused bias.
    xw = (jnp.dot(x_ref[...], wih, preferred_element_type=jnp.float32)
          + b)                                   # (T*B, H), rows ordered (t, b)

    # (2) Recurrence, fully unrolled (T small & static). h0 == 0, so t=0 needs
    #     no matmul; per remaining step only h @ W_hh^T sits on the serial path.
    # TODO(synk): could hold W_hh stationary in the MXU via pltpu.matmul_push_rhs
    # + matmul_acc_lhs/matmul_pop; left to Mosaic for robustness at this size.
    h = jnp.maximum(xw[0:B, :], 0.0)             # t = 0
    hs = [h]
    for t in range(1, T):
        h = jnp.maximum(
            xw[t * B:(t + 1) * B, :]
            + jnp.dot(h, whh, preferred_element_type=jnp.float32),
            0.0)                                 # relu nonlinearity
        hs.append(h)

    hn_ref[0] = h                                # final hidden (1, B, H)

    # (3) Deferred FC head: hidden slab built in-register with ONE concatenate,
    #     then ONE (T*B, H) @ (H, 128) matmul and a single dense (unmasked) store.
    slab = jnp.concatenate(hs, axis=0)           # (T*B, H), rows (t, b)
    out_ref[...] = (jnp.dot(slab, wfc, preferred_element_type=jnp.float32)
                    + bfc).astype(out_ref.dtype)


def rnn_model_forward(x, params):
    """x: (B, T, I) float32. Returns (fc_out (B*T, O), hidden (1, B, H))."""
    B, T, I = x.shape
    H = params["w_ih"].shape[0]
    O = params["w_fc"].shape[0]

    # Wrapper-side glue (all tiny / free in XLA at these sizes).
    x_tb = jnp.transpose(x, (1, 0, 2)).reshape(T * B, I)   # (t, b) row order

    def pad_lanes(a):
        return jnp.pad(a, ((0, 0), (0, LANE - a.shape[1])))

    wih_t = params["w_ih"].T                               # (I, H)
    whh_t = params["w_hh"].T                               # (H, H)
    b_rnn = (params["b_ih"] + params["b_hh"]).reshape(1, H)
    wfc_t = params["w_fc"].T                               # (H, O)
    b_fc = params["b_fc"].reshape(1, O)

    # One packed, lane-dense parameter slab -> single HBM->VMEM DMA.
    slab = jnp.concatenate(
        [pad_lanes(wih_t), pad_lanes(whh_t), pad_lanes(b_rnn),
         pad_lanes(wfc_t), pad_lanes(b_fc)], axis=0)       # (I + 2H + 2, 128)
    rows = slab.shape[0]
    rows_pad = -(-rows // 8) * 8
    slab = jnp.pad(slab, ((0, rows_pad - rows), (0, 0)))

    kernel = functools.partial(rnn_fused_kernel, B=B, T=T, I=I, H=H)

    out_pad, h_n = pl.pallas_call(
        kernel,
        out_shape=(jax.ShapeDtypeStruct((T * B, LANE), jnp.float32),
                   jax.ShapeDtypeStruct((1, B, H), jnp.float32)),
        # Single invocation (no grid): every operand is a whole-array VMEM block,
        # so HBM traffic is one contiguous load/store per tensor (2 in, 2 out).
        in_specs=[pl.BlockSpec(memory_space=pltpu.MemorySpace.VMEM)] * 2,
        out_specs=(pl.BlockSpec(memory_space=pltpu.MemorySpace.VMEM),
                   pl.BlockSpec(memory_space=pltpu.MemorySpace.VMEM)),
    )(x_tb, slab)

    # (t, b) -> (b, t) reorder + drop lane padding: ~KB-scale, free in XLA.
    fc_out = jnp.transpose(
        out_pad.reshape(T, B, LANE)[:, :, :O], (1, 0, 2)).reshape(B * T, O)
    return fc_out, h_n


def init_params(key, input_size, output_size, hidden=HIDDEN):
    """Deterministic init mimicking PyTorch's U(-1/sqrt(H), 1/sqrt(H))."""
    ks = jax.random.split(key, 6)
    bound = 1.0 / jnp.sqrt(hidden)
    u = lambda k, shape: jax.random.uniform(k, shape, jnp.float32, -bound, bound)
    return {
        "w_ih": u(ks[0], (hidden, input_size)),
        "w_hh": u(ks[1], (hidden, hidden)),
        "b_ih": u(ks[2], (hidden,)),
        "b_hh": u(ks[3], (hidden,)),
        "w_fc": u(ks[4], (output_size, hidden)),
        "b_fc": u(ks[5], (output_size,)),
    }


def reference_forward(x, params):
    """Pure-JAX reference of the PyTorch forward."""
    B, T, I = x.shape
    H = params["w_ih"].shape[0]

    def step(h, x_t):
        h_new = jnp.maximum(
            x_t @ params["w_ih"].T + params["b_ih"]
            + h @ params["w_hh"].T + params["b_hh"], 0.0)
        return h_new, h_new

    h0 = jnp.zeros((B, H), jnp.float32)
    h_last, outs = jax.lax.scan(step, h0, jnp.transpose(x, (1, 0, 2)))
    out = jnp.transpose(outs, (1, 0, 2)).reshape(-1, H)
    fc = out @ params["w_fc"].T + params["b_fc"]
    return fc, h_last[None]


if __name__ == "__main__":
    B, T, I, O = 2, 8, 16, 10
    key = jax.random.PRNGKey(0)
    k_x, k_p = jax.random.split(key)
    x = jax.random.normal(k_x, (B, T, I), jnp.float32)
    params = init_params(k_p, I, O)

    fwd = jax.jit(rnn_model_forward)
    fc_out, h_n = fwd(x, params)
    jax.block_until_ready((fc_out, h_n))

    fc_ref, h_ref = reference_forward(x, params)
    assert fc_out.shape == (B * T, O) and h_n.shape == (1, B, HIDDEN)
    assert jnp.allclose(fc_out, fc_ref, atol=1e-4, rtol=1e-4)
    assert jnp.allclose(h_n, h_ref, atol=1e-4, rtol=1e-4)
    print("KERNEL_OK")
</pallas_src>

<mosaic_0001>
module attributes {stable_mosaic.version = 11 : i64} {
  func.func @rnn_fused_kernel(%arg0: memref<16x16xf32, #tpu.memory_space<vmem>>, %arg1: memref<88x128xf32, #tpu.memory_space<vmem>>, %arg2: memref<16x128xf32, #tpu.memory_space<vmem>>, %arg3: memref<1x2x32xf32, #tpu.memory_space<vmem>>) attributes {dimension_semantics = [], scalar_prefetch = 0 : i64, scratch_operands = 0 : i64, tpu.core_type = #tpu.core_type<tc>} {
    %c0 = arith.constant 0 : index
    %c0_0 = arith.constant 0 : index
    %0 = vector.load %arg1[%c0, %c0_0] : memref<88x128xf32, #tpu.memory_space<vmem>>, vector<16x32xf32>
    %c16 = arith.constant 16 : index
    %c0_1 = arith.constant 0 : index
    %1 = vector.load %arg1[%c16, %c0_1] : memref<88x128xf32, #tpu.memory_space<vmem>>, vector<32x32xf32>
    %c48 = arith.constant 48 : index
    %c0_2 = arith.constant 0 : index
    %2 = vector.load %arg1[%c48, %c0_2] : memref<88x128xf32, #tpu.memory_space<vmem>>, vector<1x32xf32>
    %c49 = arith.constant 49 : index
    %c0_3 = arith.constant 0 : index
    %3 = vector.load %arg1[%c49, %c0_3] : memref<88x128xf32, #tpu.memory_space<vmem>>, vector<32x128xf32>
    %c81 = arith.constant 81 : index
    %c0_4 = arith.constant 0 : index
    %4 = vector.load %arg1[%c81, %c0_4] : memref<88x128xf32, #tpu.memory_space<vmem>>, vector<1x128xf32>
    %c0_5 = arith.constant 0 : index
    %c0_6 = arith.constant 0 : index
    %5 = vector.load %arg0[%c0_5, %c0_6] : memref<16x16xf32, #tpu.memory_space<vmem>>, vector<16x16xf32>
    %cst = arith.constant dense<0.000000e+00> : vector<16x32xf32>
    %6 = tpu.matmul %5, %0, %cst {dimension_numbers = #tpu.dot_dimension_numbers<[1], [0], [0], [1], [0, 0, 1, 1], [], []>} : vector<16x16xf32>, vector<16x32xf32>, vector<16x32xf32> -> vector<16x32xf32>
    %7 = vector.broadcast %2 : vector<1x32xf32> to vector<16x32xf32>
    %8 = arith.addf %6, %7 : vector<16x32xf32>
    %9 = vector.extract_strided_slice %8 {offsets = [0, 0], sizes = [2, 32], strides = [1, 1]} : vector<16x32xf32> to vector<2x32xf32>
    %cst_7 = arith.constant 0.000000e+00 : f32
    %10 = vector.broadcast %cst_7 : f32 to vector<2x32xf32>
    %11 = arith.maximumf %9, %10 : vector<2x32xf32>
    %12 = vector.extract_strided_slice %8 {offsets = [2, 0], sizes = [2, 32], strides = [1, 1]} : vector<16x32xf32> to vector<2x32xf32>
    %cst_8 = arith.constant dense<0.000000e+00> : vector<2x32xf32>
    %13 = tpu.matmul %11, %1, %cst_8 {dimension_numbers = #tpu.dot_dimension_numbers<[1], [0], [0], [1], [0, 0, 1, 1], [], []>} : vector<2x32xf32>, vector<32x32xf32>, vector<2x32xf32> -> vector<2x32xf32>
    %14 = arith.addf %12, %13 : vector<2x32xf32>
    %cst_9 = arith.constant 0.000000e+00 : f32
    %15 = vector.broadcast %cst_9 : f32 to vector<2x32xf32>
    %16 = arith.maximumf %14, %15 : vector<2x32xf32>
    %17 = vector.extract_strided_slice %8 {offsets = [4, 0], sizes = [2, 32], strides = [1, 1]} : vector<16x32xf32> to vector<2x32xf32>
    %cst_10 = arith.constant dense<0.000000e+00> : vector<2x32xf32>
    %18 = tpu.matmul %16, %1, %cst_10 {dimension_numbers = #tpu.dot_dimension_numbers<[1], [0], [0], [1], [0, 0, 1, 1], [], []>} : vector<2x32xf32>, vector<32x32xf32>, vector<2x32xf32> -> vector<2x32xf32>
    %19 = arith.addf %17, %18 : vector<2x32xf32>
    %cst_11 = arith.constant 0.000000e+00 : f32
    %20 = vector.broadcast %cst_11 : f32 to vector<2x32xf32>
    %21 = arith.maximumf %19, %20 : vector<2x32xf32>
    %22 = vector.extract_strided_slice %8 {offsets = [6, 0], sizes = [2, 32], strides = [1, 1]} : vector<16x32xf32> to vector<2x32xf32>
    %cst_12 = arith.constant dense<0.000000e+00> : vector<2x32xf32>
    %23 = tpu.matmul %21, %1, %cst_12 {dimension_numbers = #tpu.dot_dimension_numbers<[1], [0], [0], [1], [0, 0, 1, 1], [], []>} : vector<2x32xf32>, vector<32x32xf32>, vector<2x32xf32> -> vector<2x32xf32>
    %24 = arith.addf %22, %23 : vector<2x32xf32>
    %cst_13 = arith.constant 0.000000e+00 : f32
    %25 = vector.broadcast %cst_13 : f32 to vector<2x32xf32>
    %26 = arith.maximumf %24, %25 : vector<2x32xf32>
    %27 = vector.extract_strided_slice %8 {offsets = [8, 0], sizes = [2, 32], strides = [1, 1]} : vector<16x32xf32> to vector<2x32xf32>
    %cst_14 = arith.constant dense<0.000000e+00> : vector<2x32xf32>
    %28 = tpu.matmul %26, %1, %cst_14 {dimension_numbers = #tpu.dot_dimension_numbers<[1], [0], [0], [1], [0, 0, 1, 1], [], []>} : vector<2x32xf32>, vector<32x32xf32>, vector<2x32xf32> -> vector<2x32xf32>
    %29 = arith.addf %27, %28 : vector<2x32xf32>
    %cst_15 = arith.constant 0.000000e+00 : f32
    %30 = vector.broadcast %cst_15 : f32 to vector<2x32xf32>
    %31 = arith.maximumf %29, %30 : vector<2x32xf32>
    %32 = vector.extract_strided_slice %8 {offsets = [10, 0], sizes = [2, 32], strides = [1, 1]} : vector<16x32xf32> to vector<2x32xf32>
    %cst_16 = arith.constant dense<0.000000e+00> : vector<2x32xf32>
    %33 = tpu.matmul %31, %1, %cst_16 {dimension_numbers = #tpu.dot_dimension_numbers<[1], [0], [0], [1], [0, 0, 1, 1], [], []>} : vector<2x32xf32>, vector<32x32xf32>, vector<2x32xf32> -> vector<2x32xf32>
    %34 = arith.addf %32, %33 : vector<2x32xf32>
    %cst_17 = arith.constant 0.000000e+00 : f32
    %35 = vector.broadcast %cst_17 : f32 to vector<2x32xf32>
    %36 = arith.maximumf %34, %35 : vector<2x32xf32>
    %37 = vector.extract_strided_slice %8 {offsets = [12, 0], sizes = [2, 32], strides = [1, 1]} : vector<16x32xf32> to vector<2x32xf32>
    %cst_18 = arith.constant dense<0.000000e+00> : vector<2x32xf32>
    %38 = tpu.matmul %36, %1, %cst_18 {dimension_numbers = #tpu.dot_dimension_numbers<[1], [0], [0], [1], [0, 0, 1, 1], [], []>} : vector<2x32xf32>, vector<32x32xf32>, vector<2x32xf32> -> vector<2x32xf32>
    %39 = arith.addf %37, %38 : vector<2x32xf32>
    %cst_19 = arith.constant 0.000000e+00 : f32
    %40 = vector.broadcast %cst_19 : f32 to vector<2x32xf32>
    %41 = arith.maximumf %39, %40 : vector<2x32xf32>
    %42 = vector.extract_strided_slice %8 {offsets = [14, 0], sizes = [2, 32], strides = [1, 1]} : vector<16x32xf32> to vector<2x32xf32>
    %cst_20 = arith.constant dense<0.000000e+00> : vector<2x32xf32>
    %43 = tpu.matmul %41, %1, %cst_20 {dimension_numbers = #tpu.dot_dimension_numbers<[1], [0], [0], [1], [0, 0, 1, 1], [], []>} : vector<2x32xf32>, vector<32x32xf32>, vector<2x32xf32> -> vector<2x32xf32>
    %44 = arith.addf %42, %43 : vector<2x32xf32>
    %cst_21 = arith.constant 0.000000e+00 : f32
    %45 = vector.broadcast %cst_21 : f32 to vector<2x32xf32>
    %46 = arith.maximumf %44, %45 : vector<2x32xf32>
    %c0_22 = arith.constant 0 : index
    %c0_23 = arith.constant 0 : index
    %c0_24 = arith.constant 0 : index
    %47 = vector.load %arg3[%c0_22, %c0_23, %c0_24] : memref<1x2x32xf32, #tpu.memory_space<vmem>>, vector<1x2x32xf32>
    %48 = vector.shape_cast %47 : vector<1x2x32xf32> to vector<2x32xf32>
    %49 = vector.shape_cast %46 : vector<2x32xf32> to vector<1x2x32xf32>
    tpu.vector_store %arg3[%c0_22, %c0_23, %c0_24], %49 {strides = array<i32>} : memref<1x2x32xf32, #tpu.memory_space<vmem>>, vector<1x2x32xf32>,
    %50 = tpu.concatenate %11, %16, %21, %26, %31, %36, %41, %46 in 0 : vector<2x32xf32>, vector<2x32xf32>, vector<2x32xf32>, vector<2x32xf32>, vector<2x32xf32>, vector<2x32xf32>, vector<2x32xf32>, vector<2x32xf32> -> vector<16x32xf32>
    %cst_25 = arith.constant dense<0.000000e+00> : vector<16x128xf32>
    %51 = tpu.matmul %50, %3, %cst_25 {dimension_numbers = #tpu.dot_dimension_numbers<[1], [0], [0], [1], [0, 0, 1, 1], [], []>} : vector<16x32xf32>, vector<32x128xf32>, vector<16x128xf32> -> vector<16x128xf32>
    %52 = vector.broadcast %4 : vector<1x128xf32> to vector<16x128xf32>
    %53 = arith.addf %51, %52 : vector<16x128xf32>
    %c0_26 = arith.constant 0 : index
    %c0_27 = arith.constant 0 : index
    %54 = vector.load %arg2[%c0_26, %c0_27] : memref<16x128xf32, #tpu.memory_space<vmem>>, vector<16x128xf32>
    tpu.vector_store %arg2[%c0_26, %c0_27], %53 {strides = array<i32>} : memref<16x128xf32, #tpu.memory_space<vmem>>, vector<16x128xf32>,
    return
  }
}

</mosaic_0001>

<bundles_post_ra>
// kernel: rnn_model_forward.1
= control target key start
LH: loop header
LB: loop body
LE: loop exit
PB: predicated region body
PF: predicated region fallthrough
CT: control target
= control target key end

     0   :  { %vm29_vm0 = vcmask 130048   ;;  %s451_s0 = inlined_call_operand.vmem [shape: f32[16,16], index: 0, kind: input, shape index: {}]   ;;  %s452_s1 = inlined_call_operand.vmem [shape: f32[88,128], index: 1, kind: input, shape index: {}]   ;;  %s453_s2 = inlined_call_operand.vmem [shape: f32[16,128], index: 2, kind: output, shape index: {0}]   ;;  %s454_s3 = inlined_call_operand.hbm [shape: f32[1,2,32], index: 3, kind: output, shape index: {1}]  }
   0x1   :  { %v15_v0 = vld [vmem:[%s452_s1 + $0x8] sm:$0xff]  ;;  %v14_v1 = vld [vmem:[%s452_s1] sm:$0xff] }
   0x2   :  { %50 = vmatpush.msra.mxu0 %v15_v0  ;;  %v26_v2 = vld [vmem:[%s451_s0] sm:$0xff]  ;;  %v19_v3 = vld [vmem:[%s452_s1 + $0x28] sm:$0xff] }
   0x3   :  { %76 = vmatpush.msra.mxu2 %v19_v3  ;;  %134 = vmatpush.msra.mxu3 %v19_v3 }
   0x4   :  { %9 = vsyncpa [#allocation3], 0  ;;  %51 = vmatpush.msra.mxu0 %v14_v1  ;;  %163 = vmatpush.msra.mxu1 %v19_v3  ;;  %v18_v4 = vld [vmem:[%s452_s1 + $0x20] sm:$0xff]  ;;  %v17_v5 = vld [vmem:[%s452_s1 + $0x18] sm:$0xff]  ;;  %vm60_vm1 = vcmask 261120   ;;  %vm261_vm2 = vcmask 1041408  }
   0x5   :  { %322 = vmatmul.msk.f32.vlgmr.msra.gmra.mxu0 %vm29_vm0, %v26_v2  ;;  %77 = vmatpush.msra.mxu2 %v18_v4  ;;  %v16_v6 = vld [vmem:[%s452_s1 + $0x10] sm:$0xff]  ;;  %vm263_vm3 = vcmask 1043456   ;;  %v27_v23 = vld [vmem:[%s451_s0 + $0x8] sm:$0xff]  ;;  %v22_v26 = vld [vmem:[%s452_s1 + $0x39] sm:$0xff]  ;;  %vm265_vm4 = vcmask 1045504   ;;  %vm259_vm5 = vcmask 261126  }
   0x6   :  { %246 = vmatpush.msrb.mxu0 %v19_v3  ;;  %135 = vmatpush.msra.mxu3 %v18_v4  ;;  %v334_v7 = vld [vmem:[%s452_s1 + $0x30] ss:$0 sm:$0xff]  ;;  %v23_v25 = vld [vmem:[%s452_s1 + $0x41] sm:$0xff]  ;;  %v21_v27 = vld [vmem:[%s452_s1 + $0x31] sm:$0xff]  ;;  %s311_s17 = sshll.u32 %s454_s3, 4  ;;  %s312_s17 = int_to_ptr.hbm [resolvable:$true] %s311_s17 }
   0x7   :  { %164 = vmatpush.msra.mxu1 %v18_v4  ;;  %78 = vmatpush.msra.mxu2 %v17_v5  ;;  %v24_v24 = vld [vmem:[%s452_s1 + $0x49] sm:$0xff]  ;;  %v335_v39 = vld [vmem:[%s452_s1 + $0x51] ss:$0 sm:$0xff]  ;;  %s362_s1 = smov [#allocation2]  }
   0x8   :  { %247 = vmatpush.msrb.mxu0 %v18_v4  ;;  %136 = vmatpush.msra.mxu3 %v17_v5  ;;  %s309_s14 = sshll.u32 %s362_s1, 4  ;;  %s310_s14 = int_to_ptr.vmem [resolvable:$true] %s309_s14 }
   0x9   :  { %165 = vmatpush.msra.mxu1 %v17_v5  ;;  %79 = vmatpush.msra.mxu2 %v16_v6 }
   0xa   :  { %248 = vmatpush.msrb.mxu0 %v17_v5  ;;  %137 = vmatpush.msra.mxu3 %v16_v6 }
   0xb   :  { %105 = vmatpush.msrb.mxu2 %v19_v3  ;;  %166 = vmatpush.msra.mxu1 %v16_v6 }
   0xc   :  { %217 = vmatpush.msrb.mxu3 %v19_v3  ;;  %249 = vmatpush.msrb.mxu0 %v16_v6 }
   0xd   :  { %106 = vmatpush.msrb.mxu2 %v18_v4  ;;  %323 = vmatmul.msk.f32.gmra.mxu0 %vm29_vm0, %v27_v23 }
   0xe   :  { %218 = vmatpush.msrb.mxu3 %v18_v4  ;;  %289 = vmatpush.msrb.mxu1 %v24_v24 }
   0xf   :  { %107 = vmatpush.msrb.mxu2 %v17_v5 }
  0x10   :  { %219 = vmatpush.msrb.mxu3 %v17_v5  ;;  %290 = vmatpush.msrb.mxu1 %v23_v25 }
  0x11   :  { %108 = vmatpush.msrb.mxu2 %v16_v6 }
  0x12   :  { %220 = vmatpush.msrb.mxu3 %v16_v6  ;;  %291 = vmatpush.msrb.mxu1 %v22_v26 }
  0x14   :  { %292 = vmatpush.msrb.mxu1 %v21_v27 }
  0x82   :  { %v53_v8 = vpop.f32.mrf.mxu0 }
  0x83   :  { %v54_v9 = vadd.f32 %v334_v7, %v53_v8 }
  0x85   :  { %v59_v10 = vmax.f32 %v54_v9, 0.0 }
  0x87   :  { %324 = vmatmul.msk.f32.vlgmr.msra.gmra.mxu2 %vm60_vm1, %v59_v10 }
  0x88   :  { %188 = vmatpush.msra.mxu2 %v19_v3 }
  0x8a   :  { %189 = vmatpush.msra.mxu2 %v18_v4  ;;  %v56_v34 = vpop.f32.mrf.mxu0 }
  0x8b   :  { %v57_v35 = vadd.f32 %v334_v7, %v56_v34 }
  0x8c   :  { %190 = vmatpush.msra.mxu2 %v17_v5 }
  0x8e   :  { %191 = vmatpush.msra.mxu2 %v16_v6 }
 0x10a   :  { %v81_v11 = vpop.f32.mrf.mxu2 }
 0x10b   :  { %v85_v12 = vrot.slane %v81_v11, 6 }
 0x10d   :  { %v87_v13 = vadd.f32 %v85_v12, %v54_v9 }
 0x10f   :  { %v88_v14 = vmax.f32 %v87_v13, 0.0 }
 0x111   :  { %v90_v15 = vrot.slane %v88_v14, 2  ;;  %v262_v20 = vsel %vm261_vm2, %v59_v10, %v88_v14 }
 0x113   :  { %325 = vmatmul.msk.f32.vlgmr.msrb.gmra.mxu2 %vm60_vm1, %v90_v15 }
 0x196   :  { %v110_v16 = vpop.f32.mrf.mxu2 }
 0x197   :  { %v114_v17 = vrot.slane %v110_v16, 4 }
 0x199   :  { %v116_v18 = vadd.f32 %v114_v17, %v54_v9 }
 0x19b   :  { %v117_v19 = vmax.f32 %v116_v18, 0.0 }
 0x19d   :  { %v119_v21 = vrot.slane %v117_v19, 4  ;;  %v264_v22 = vsel %vm263_vm3, %v262_v20, %v117_v19 }
 0x19f   :  { %326 = vmatmul.msk.f32.vlgmr.msra.gmra.mxu3 %vm60_vm1, %v119_v21 }
 0x222   :  { %v139_v28 = vpop.f32.mrf.mxu3 }
 0x223   :  { %v143_v29 = vrot.slane %v139_v28, 2 }
 0x225   :  { %v145_v30 = vadd.f32 %v143_v29, %v54_v9 }
 0x227   :  { %v146_v31 = vmax.f32 %v145_v30, 0.0 }
 0x229   :  { %v148_v32 = vrot.slane %v146_v31, 6  ;;  %v266_v33 = vsel %vm265_vm4, %v264_v22, %v146_v31 }
 0x22b   :  { %327 = vmatmul.msk.f32.vlgmr.msra.gmra.mxu1 %vm60_vm1, %v148_v32 }
 0x233   :  { %331 = vmatmul.msk.f32.vlgmr.msrb.gmra.mxu1 %vm60_vm1, %v266_v33 }
 0x2a8   :  { %v168_v36 = vpop.f32.mrf.mxu1 }
 0x2a9   :  { %v171_v37 = vadd.f32 %v168_v36, %v57_v35 }
 0x2ab   :  { %v172_v38 = vmax.f32 %v171_v37, 0.0 }
 0x2ad   :  { %328 = vmatmul.msk.f32.vlgmr.msra.gmra.mxu2 %vm60_vm1, %v172_v38 }
 0x2b0   :  { %v294_v40 = vpop.f32.mrf.mxu1 }
 0x2b1   :  { %v295_v41 = vadd.f32 %v335_v39, %v294_v40 }
 0x2b3   :  { %300 = vst [vmem:[%s453_s2] sm:$0xff] %v295_v41 }
 0x330   :  { %v193_v42 = vpop.f32.mrf.mxu2 }
 0x331   :  { %v197_v43 = vrot.slane %v193_v42, 6 }
 0x333   :  { %v199_v44 = vadd.f32 %v197_v43, %v57_v35 }
 0x335   :  { %v200_v45 = vmax.f32 %v199_v44, 0.0 }
 0x337   :  { %v202_v46 = vrot.slane %v200_v45, 2  ;;  %v267_v51 = vsel %vm261_vm2, %v172_v38, %v200_v45 }
 0x339   :  { %329 = vmatmul.msk.f32.vlgmr.msrb.gmra.mxu3 %vm60_vm1, %v202_v46 }
 0x3bc   :  { %v222_v47 = vpop.f32.mrf.mxu3 }
 0x3bd   :  { %v226_v48 = vrot.slane %v222_v47, 4 }
 0x3bf   :  { %v228_v49 = vadd.f32 %v226_v48, %v57_v35 }
 0x3c1   :  { %v229_v50 = vmax.f32 %v228_v49, 0.0 }
 0x3c3   :  { %v231_v52 = vrot.slane %v229_v50, 4  ;;  %v268_v53 = vsel %vm263_vm3, %v267_v51, %v229_v50 }
 0x3c5   :  { %330 = vmatmul.msk.f32.vlgmr.msrb.gmra.mxu0 %vm60_vm1, %v231_v52 }
 0x442   :  { %v251_v54 = vpop.f32.mrf.mxu0 }
 0x443   :  { %v255_v55 = vrot.slane %v251_v54, 2 }
 0x445   :  { %v257_v56 = vadd.f32 %v255_v55, %v57_v35 }
 0x447   :  { %v258_v57 = vmax.f32 %v257_v56, 0.0 }
 0x449   :  { %v269_v58 = vsel %vm265_vm4, %v268_v53, %v258_v57  ;;  %260 = vst.msk [vmem:[#allocation2 - $0x6] sm:$0xc0] %vm259_vm5, %v258_v57 }
 0x44a   :  { %332 = vmatmul.msk.f32.gmra.mxu1 %vm60_vm1, %v269_v58  ;;  %314 = dma.vmem_to_hbm [thread:$0]  %s310_s14, 32, %s312_s17, [#allocation3]  }
 0x4c7   :  { %v297_v59 = vpop.f32.mrf.mxu1 }
 0x4c8   :  { %v298_v60 = vadd.f32 %v335_v39, %v297_v59 }
 0x4ca   :  { %301 = vst [vmem:[%s453_s2 + $0x8] sm:$0xff] %v298_v60 }
 0x4cb   :  { %360 = dma.done.wait [#allocation3], 32  }
 0x4cc   :  { %361 = vsyncadd [#allocation3], 4294967264 }
 0x4cd   :  { %321 = vsyncpa [#allocation3], 1 }

</bundles_post_ra>
